<compile_context>
chip_gen: v7x
topology: tpu7x:2x2x1
jax: 0.10.0
libtpu: 0.0.40
codegen_flags: <defaults>
</compile_context>

<pallas_src>
import functools

import jax
import jax.numpy as jnp
from jax.experimental import pallas as pl
from jax.experimental.pallas import tpu as pltpu

LN_EPS = 1e-5  # torch.nn.LayerNorm default eps


# --------------------------------------------------------------------------- #
# Helpers
# --------------------------------------------------------------------------- #
def _round_up(x, m):
    return (x + m - 1) // m * m


def _device_kind():
    try:
        return jax.devices()[0].device_kind.lower()
    except Exception:  # defensive
        return ""


def _vmem_limit_bytes(kind):
    if "7" in kind:                      # v7x: 64 MiB physical / TC -> headroom
        return 48 * 1024 * 1024
    if "v5" in kind or "v6" in kind:     # v5e/v5p/v6e: 128 MiB physical
        return 100 * 1024 * 1024
    return 64 * 1024 * 1024


def _lane_multiple(kind):
    # v6e / v7x MXUs are 256 wide; a trailing 128-wide N slab runs at half width.
    if "7" in kind or "v6" in kind:
        return 256
    return 128


def _pick_col_tile(dpad):
    for t in (512, 256, 128):
        if t <= dpad and dpad % t == 0:
            return t
    return dpad


def _resident_spec(shape, grid_rank):
    """BlockSpec for an operand identical at every grid step.

    Constant index_map keeps it resident in VMEM; pl.Buffered(1) stops the
    pipeliner from double-buffering it (halves resident weight VMEM).
    """
    zeros = (0,) * len(shape)
    index_map = (lambda i: zeros) if grid_rank == 1 else (lambda i, j: zeros)
    return pl.BlockSpec(shape, index_map, pipeline_mode=pl.Buffered(1))


# --------------------------------------------------------------------------- #
# Kernel bodies
# --------------------------------------------------------------------------- #
def _hidden_acts(x_f32, g_ref, bt_ref, w1_ref, b1_ref):
    """LayerNorm (f32 stats) -> Linear -> Tanh.  bf16 MXU feed, f32 accumulate."""
    mean = jnp.mean(x_f32, axis=-1, keepdims=True)
    var = jnp.mean((x_f32 - mean) ** 2, axis=-1, keepdims=True)
    xn = (x_f32 - mean) * jax.lax.rsqrt(var + LN_EPS)
    xn = xn * g_ref[...] + bt_ref[...]
    h = jnp.dot(xn.astype(jnp.bfloat16), w1_ref[...],
                preferred_element_type=jnp.float32) + b1_ref[...]
    return jnp.tanh(h)  # EUP


def _row_kernel_skip(x_ref, g_ref, bt_ref, w1_ref, b1_ref, w2_ref, b2_ref,
                     ws_ref, bs_ref, o_ref):
    """Row-tiled path, skip is a Linear layer (mlp_hidden != hidden)."""
    x = x_ref[...].astype(jnp.float32)
    h = _hidden_acts(x, g_ref, bt_ref, w1_ref, b1_ref)
    mlp = jnp.dot(h.astype(jnp.bfloat16), w2_ref[...],
                  preferred_element_type=jnp.float32) + b2_ref[...]
    # Skip Linear feeds the MXU in bf16 (f32 accumulation); the residual path
    # therefore carries bf16 weight rounding (documented precision trade-off).
    skip = jnp.dot(x.astype(jnp.bfloat16), ws_ref[...],
                   preferred_element_type=jnp.float32) + bs_ref[...]
    o_ref[...] = (skip + mlp).astype(o_ref.dtype)


def _row_kernel_identity(x_ref, g_ref, bt_ref, w1_ref, b1_ref, w2_ref, b2_ref,
                         o_ref, *, dout):
    """Row-tiled path, nn.Identity skip: exact f32 residual add, no skip matmul."""
    x = x_ref[...].astype(jnp.float32)
    h = _hidden_acts(x, g_ref, bt_ref, w1_ref, b1_ref)
    mlp = jnp.dot(h.astype(jnp.bfloat16), w2_ref[...],
                  preferred_element_type=jnp.float32) + b2_ref[...]
    if dout == o_ref.shape[-1]:
        o_ref[...] = (x + mlp).astype(o_ref.dtype)
    else:
        # dout padded to a lane-dense width; padded columns are sliced off by
        # the wrapper, so only the first `dout` columns need the residual.
        o_ref[...] = mlp.astype(o_ref.dtype)
        o_ref[:, :dout] = (x + mlp[:, :dout]).astype(o_ref.dtype)


def _col_kernel_skip(x_ref, g_ref, bt_ref, w1_ref, b1_ref, w2c_ref, b2c_ref,
                     wsc_ref, bsc_ref, o_ref, h_ref):
    """Column-tiled fallback (large hidden): h computed once per row tile."""
    @pl.when(pl.program_id(1) == 0)
    def _():
        x = x_ref[...].astype(jnp.float32)
        h_ref[...] = _hidden_acts(x, g_ref, bt_ref, w1_ref, b1_ref).astype(jnp.bfloat16)

    mlp = jnp.dot(h_ref[...], w2c_ref[...],
                  preferred_element_type=jnp.float32) + b2c_ref[...]
    skip = jnp.dot(x_ref[...].astype(jnp.bfloat16), wsc_ref[...],
                   preferred_element_type=jnp.float32) + bsc_ref[...]
    o_ref[...] = (skip + mlp).astype(o_ref.dtype)


def _col_kernel_identity(x_ref, xcol_ref, g_ref, bt_ref, w1_ref, b1_ref,
                         w2c_ref, b2c_ref, o_ref, h_ref):
    """Column-tiled fallback with nn.Identity skip (requires dpad == din)."""
    @pl.when(pl.program_id(1) == 0)
    def _():
        x = x_ref[...].astype(jnp.float32)
        h_ref[...] = _hidden_acts(x, g_ref, bt_ref, w1_ref, b1_ref).astype(jnp.bfloat16)

    mlp = jnp.dot(h_ref[...], w2c_ref[...],
                  preferred_element_type=jnp.float32) + b2c_ref[...]
    o_ref[...] = (xcol_ref[...].astype(jnp.float32) + mlp).astype(o_ref.dtype)


# --------------------------------------------------------------------------- #
# Parameters
# --------------------------------------------------------------------------- #
def init_params(key, mlp_hidden, hidden, dtype=jnp.float32):
    """Raw parameters ([in, out] weight layout).  ws/bs are None for Identity skip."""
    ks = jax.random.split(key, 6)
    gamma = jnp.ones((mlp_hidden,), dtype)
    beta = jnp.zeros((mlp_hidden,), dtype)
    w1 = jax.random.normal(ks[0], (mlp_hidden, hidden), dtype) * 0.05
    b1 = jax.random.normal(ks[1], (hidden,), dtype) * 0.01
    w2 = jax.random.normal(ks[2], (hidden, hidden), dtype) * 0.05
    b2 = jax.random.normal(ks[3], (hidden,), dtype) * 0.01
    if mlp_hidden == hidden:
        ws, bs = None, None                       # nn.Identity skip
    else:
        ws = jax.random.normal(ks[4], (mlp_hidden, hidden), dtype) * 0.05
        bs = jax.random.normal(ks[5], (hidden,), dtype) * 0.01
    return (gamma, beta, w1, b1, w2, b2, ws, bs)


def prepare_params(params, *, lane_multiple=None):
    """One-time (hoisted) weight prep: pad dout to the MXU width + cast to bf16."""
    gamma, beta, w1, b1, w2, b2, ws, bs = params
    kind = _device_kind()
    lm = _lane_multiple(kind) if lane_multiple is None else lane_multiple
    din, dout = w1.shape
    dpad = _round_up(dout, lm)
    pc = dpad - dout

    def pad_w(w):
        return jnp.pad(w, ((0, 0), (0, pc))) if pc else w

    def pad_b(b):
        b = b.reshape(1, -1)
        return jnp.pad(b, ((0, 0), (0, pc))) if pc else b

    return {
        "kind": kind, "din": din, "dout": dout, "dpad": dpad,
        "has_skip": ws is not None,
        "gamma": gamma.reshape(1, -1).astype(jnp.float32),
        "beta": beta.reshape(1, -1).astype(jnp.float32),
        "w1": pad_w(w1).astype(jnp.bfloat16),
        "b1": pad_b(b1).astype(jnp.float32),
        "w2": (jnp.pad(w2, ((0, pc), (0, pc))) if pc else w2).astype(jnp.bfloat16),
        "b2": pad_b(b2).astype(jnp.float32),
        "ws": pad_w(ws).astype(jnp.bfloat16) if ws is not None else None,
        "bs": pad_b(bs).astype(jnp.float32) if bs is not None else None,
    }


# --------------------------------------------------------------------------- #
# Forward
# --------------------------------------------------------------------------- #
def mlp_forward(x, prep, *, tile_rows=None, col_tile=None):
    """x: [..., mlp_hidden] -> [..., hidden]."""
    din, dout, dpad = prep["din"], prep["dout"], prep["dpad"]
    has_skip, kind = prep["has_skip"], prep["kind"]
    assert x.shape[-1] == din, (x.shape, din)

    lead = x.shape[:-1]
    x2d = x.reshape(-1, din)
    n = x2d.shape[0]

    vmem_limit = _vmem_limit_bytes(kind)

    # Resident (single-buffered) weight footprint of the fully-resident path.
    w_bytes = prep["w1"].size * 2 + prep["w2"].size * 2
    if has_skip:
        w_bytes += prep["ws"].size * 2

    # Column-tiled fallback when resident weights would eat more than ~half the
    # VMEM budget (leaves room for activation double-buffers + f32 temps).
    use_cols = (col_tile is not None) or (w_bytes > vmem_limit // 2)
    if use_cols and not has_skip and dpad != din:
        # Identity skip + column tiling needs dpad == din so x can be tiled by
        # output columns; only tiny/unaligned hidden sizes hit this and those
        # always fit the fully-resident path anyway.
        use_cols = False

    # Row tile: big on v5e/v6e (128 MiB VMEM), smaller on v7x (64 MiB / TC).
    if tile_rows is None:
        if "7" in kind:
            tile_rows = 256 if use_cols else 512
        else:
            tile_rows = 512 if use_cols else 1024

    # >=2 grid steps whenever possible: activation DMA pipelines and the
    # "parallel" row axis can shard across v7x's two TensorCores.
    n8 = _round_up(max(n, 1), 8)
    half = _round_up((n8 + 1) // 2, 8)
    tm = max(8, min(tile_rows, half))
    n_pad = _round_up(n8, tm)
    if n_pad != n:
        x2d = jnp.pad(x2d, ((0, n_pad - n), (0, 0)))  # zero rows: finite, sliced off

    compiler_params = pltpu.CompilerParams(
        # "parallel" row axis -> sharded across v7x's two TensorCores (each TC
        # keeps its own resident weight copy in its 64 MiB VMEM).
        dimension_semantics=("parallel",) if not use_cols else ("parallel", "arbitrary"),
        vmem_limit_bytes=vmem_limit,
    )
    out_shape = jax.ShapeDtypeStruct((n_pad, dpad), x.dtype)

    if not use_cols:
        grid = (n_pad // tm,)
        in_specs = [
            pl.BlockSpec((tm, din), lambda i: (i, 0)),   # x rows (pipelined)
            _resident_spec((1, din), 1),                 # gamma
            _resident_spec((1, din), 1),                 # beta
            _resident_spec((din, dpad), 1),              # w1
            _resident_spec((1, dpad), 1),                # b1
            _resident_spec((dpad, dpad), 1),             # w2
            _resident_spec((1, dpad), 1),                # b2
        ]
        operands = [x2d, prep["gamma"], prep["beta"], prep["w1"], prep["b1"],
                    prep["w2"], prep["b2"]]
        if has_skip:
            in_specs += [_resident_spec((din, dpad), 1),  # ws
                         _resident_spec((1, dpad), 1)]    # bs
            operands += [prep["ws"], prep["bs"]]
            kernel = _row_kernel_skip
        else:
            kernel = functools.partial(_row_kernel_identity, dout=dout)
        out_specs = pl.BlockSpec((tm, dpad), lambda i: (i, 0))
        scratch_shapes = ()
    else:
        tn = col_tile if col_tile is not None else _pick_col_tile(dpad)
        assert dpad % tn == 0, (dpad, tn)
        grid = (n_pad // tm, dpad // tn)
        if has_skip:
            in_specs = [
                pl.BlockSpec((tm, din), lambda i, j: (i, 0)),    # x rows (resident over j)
                _resident_spec((1, din), 2),                     # gamma
                _resident_spec((1, din), 2),                     # beta
                _resident_spec((din, dpad), 2),                  # w1 (resident)
                _resident_spec((1, dpad), 2),                    # b1
                pl.BlockSpec((dpad, tn), lambda i, j: (0, j)),   # w2 column slab
                pl.BlockSpec((1, tn), lambda i, j: (0, j)),      # b2
                pl.BlockSpec((din, tn), lambda i, j: (0, j)),    # ws column slab
                pl.BlockSpec((1, tn), lambda i, j: (0, j)),      # bs
            ]
            operands = [x2d, prep["gamma"], prep["beta"], prep["w1"], prep["b1"],
                        prep["w2"], prep["b2"], prep["ws"], prep["bs"]]
            kernel = _col_kernel_skip
        else:
            in_specs = [
                pl.BlockSpec((tm, din), lambda i, j: (i, 0)),    # x rows (for LN / w1)
                pl.BlockSpec((tm, tn), lambda i, j: (i, j)),     # x column slab (residual)
                _resident_spec((1, din), 2),
                _resident_spec((1, din), 2),
                _resident_spec((din, dpad), 2),
                _resident_spec((1, dpad), 2),
                pl.BlockSpec((dpad, tn), lambda i, j: (0, j)),
                pl.BlockSpec((1, tn), lambda i, j: (0, j)),
            ]
            operands = [x2d, x2d, prep["gamma"], prep["beta"], prep["w1"],
                        prep["b1"], prep["w2"], prep["b2"]]
            kernel = _col_kernel_identity
        out_specs = pl.BlockSpec((tm, tn), lambda i, j: (i, j))
        # Hidden activations, computed once per row tile, reused per column slab.
        scratch_shapes = [pltpu.VMEM((tm, dpad), jnp.bfloat16)]

    out = pl.pallas_call(
        kernel,
        out_shape=out_shape,
        grid_spec=pltpu.PrefetchScalarGridSpec(
            num_scalar_prefetch=0,
            grid=grid,
            in_specs=in_specs,
            out_specs=out_specs,
            scratch_shapes=scratch_shapes,
        ),
        compiler_params=compiler_params,
    )(*operands)

    return out[:n, :dout].reshape(*lead, dout)


# --------------------------------------------------------------------------- #
# Pure-JAX reference & self-test
# --------------------------------------------------------------------------- #
def _ref_forward(x, params):
    gamma, beta, w1, b1, w2, b2, ws, bs = params
    xf = x.astype(jnp.float32)
    mean = jnp.mean(xf, axis=-1, keepdims=True)
    var = jnp.mean((xf - mean) ** 2, axis=-1, keepdims=True)
    xn = (xf - mean) * jax.lax.rsqrt(var + LN_EPS) * gamma + beta
    h = jnp.tanh(xn @ w1 + b1)
    mlp = h @ w2 + b2
    skip = xf if ws is None else xf @ ws + bs
    return (skip + mlp).astype(x.dtype)


def _check(out, ref, shape):
    assert out.shape == shape, (out.shape, shape)
    err = float(jnp.max(jnp.abs(out.astype(jnp.float32) - ref.astype(jnp.float32))))
    # bf16 MXU feed (f32 accumulation) vs pure-f32 reference.
    assert err < 2e-2, err


if __name__ == "__main__":
    root = jax.random.PRNGKey(0)
    kx, k1, k2, k3, k4 = jax.random.split(root, 5)
    batch, seq = 2, 8

    # 1) Linear skip (mlp_hidden=32 != hidden=16), fully-resident row-grid path.
    x = jax.random.normal(kx, (batch, seq, 32), jnp.float32)
    p = init_params(k1, 32, 16)
    out = jax.block_until_ready(mlp_forward(x, prepare_params(p)))
    _check(out, _ref_forward(x, p), (batch, seq, 16))

    # 2) Identity skip (mlp_hidden == hidden == 32), row-grid path, f32 residual.
    p = init_params(k2, 32, 32)
    out = jax.block_until_ready(mlp_forward(x, prepare_params(p)))
    _check(out, _ref_forward(x, p), (batch, seq, 32))

    # 3) Linear skip, column-tiled fallback (forced small; used for large hidden / v7x).
    xc = jax.random.normal(kx, (batch, seq, 64), jnp.float32)
    p = init_params(k3, 64, 256)
    out = jax.block_until_ready(mlp_forward(xc, prepare_params(p), col_tile=128))
    _check(out, _ref_forward(xc, p), (batch, seq, 256))

    # 4) Identity skip, column-tiled fallback.
    xi = jax.random.normal(kx, (batch, seq, 256), jnp.float32)
    p = init_params(k4, 256, 256)
    out = jax.block_until_ready(mlp_forward(xi, prepare_params(p), col_tile=128))
    _check(out, _ref_forward(xi, p), (batch, seq, 256))

    print("KERNEL_OK")
</pallas_src>

<mosaic_0001>
module attributes {stable_mosaic.version = 11 : i64} {
  func.func @_row_kernel_skip(%arg0: i32, %arg1: memref<8x32xf32, #tpu.memory_space<vmem>>, %arg2: memref<1x32xf32, #tpu.memory_space<vmem>>, %arg3: memref<1x32xf32, #tpu.memory_space<vmem>>, %arg4: memref<32x128xbf16, #tpu.memory_space<vmem>>, %arg5: memref<1x128xf32, #tpu.memory_space<vmem>>, %arg6: memref<128x128xbf16, #tpu.memory_space<vmem>>, %arg7: memref<1x128xf32, #tpu.memory_space<vmem>>, %arg8: memref<32x128xbf16, #tpu.memory_space<vmem>>, %arg9: memref<1x128xf32, #tpu.memory_space<vmem>>, %arg10: memref<8x128xf32, #tpu.memory_space<vmem>>) attributes {dimension_semantics = [#tpu.dimension_semantics<parallel>], iteration_bounds = array<i64: 2>, scalar_prefetch = 0 : i64, scratch_operands = 0 : i64, tpu.core_type = #tpu.core_type<tc>, window_params = [{transform_indices = @transform_0, window_bounds = array<i64: 8, 32>}, {pipeline_mode = #tpu.pipeline_mode<synchronous>, transform_indices = @transform_1, window_bounds = array<i64: 1, 32>}, {pipeline_mode = #tpu.pipeline_mode<synchronous>, transform_indices = @transform_2, window_bounds = array<i64: 1, 32>}, {pipeline_mode = #tpu.pipeline_mode<synchronous>, transform_indices = @transform_3, window_bounds = array<i64: 32, 128>}, {pipeline_mode = #tpu.pipeline_mode<synchronous>, transform_indices = @transform_4, window_bounds = array<i64: 1, 128>}, {pipeline_mode = #tpu.pipeline_mode<synchronous>, transform_indices = @transform_5, window_bounds = array<i64: 128, 128>}, {pipeline_mode = #tpu.pipeline_mode<synchronous>, transform_indices = @transform_6, window_bounds = array<i64: 1, 128>}, {pipeline_mode = #tpu.pipeline_mode<synchronous>, transform_indices = @transform_7, window_bounds = array<i64: 32, 128>}, {pipeline_mode = #tpu.pipeline_mode<synchronous>, transform_indices = @transform_8, window_bounds = array<i64: 1, 128>}, {transform_indices = @transform_9, window_bounds = array<i64: 8, 128>}]} {
    %c0 = arith.constant 0 : index
    %c0_0 = arith.constant 0 : index
    %0 = vector.load %arg1[%c0, %c0_0] : memref<8x32xf32, #tpu.memory_space<vmem>>, vector<8x32xf32>
    %cst = arith.constant dense<0.000000e+00> : vector<8xf32>
    %1 = vector.multi_reduction <add>, %0, %cst [1] : vector<8x32xf32> to vector<8xf32>
    %2 = vector.shape_cast %1 : vector<8xf32> to vector<8x1xf32>
    %cst_1 = arith.constant 3.200000e+01 : f32
    %3 = vector.broadcast %cst_1 : f32 to vector<8x1xf32>
    %4 = arith.divf %2, %3 : vector<8x1xf32>
    %5 = vector.broadcast %4 : vector<8x1xf32> to vector<8x32xf32>
    %6 = arith.subf %0, %5 : vector<8x32xf32>
    %7 = arith.mulf %6, %6 : vector<8x32xf32>
    %cst_2 = arith.constant dense<0.000000e+00> : vector<8xf32>
    %8 = vector.multi_reduction <add>, %7, %cst_2 [1] : vector<8x32xf32> to vector<8xf32>
    %9 = vector.shape_cast %8 : vector<8xf32> to vector<8x1xf32>
    %cst_3 = arith.constant 3.200000e+01 : f32
    %10 = vector.broadcast %cst_3 : f32 to vector<8x1xf32>
    %11 = arith.divf %9, %10 : vector<8x1xf32>
    %12 = vector.broadcast %4 : vector<8x1xf32> to vector<8x32xf32>
    %13 = arith.subf %0, %12 : vector<8x32xf32>
    %cst_4 = arith.constant 9.99999974E-6 : f32
    %14 = vector.broadcast %cst_4 : f32 to vector<8x1xf32>
    %15 = arith.addf %11, %14 : vector<8x1xf32>
    %16 = math.rsqrt %15 : vector<8x1xf32>
    %17 = vector.broadcast %16 : vector<8x1xf32> to vector<8x32xf32>
    %18 = arith.mulf %13, %17 : vector<8x32xf32>
    %c0_5 = arith.constant 0 : index
    %c0_6 = arith.constant 0 : index
    %19 = vector.load %arg2[%c0_5, %c0_6] : memref<1x32xf32, #tpu.memory_space<vmem>>, vector<1x32xf32>
    %20 = vector.broadcast %19 : vector<1x32xf32> to vector<8x32xf32>
    %21 = arith.mulf %18, %20 : vector<8x32xf32>
    %c0_7 = arith.constant 0 : index
    %c0_8 = arith.constant 0 : index
    %22 = vector.load %arg3[%c0_7, %c0_8] : memref<1x32xf32, #tpu.memory_space<vmem>>, vector<1x32xf32>
    %23 = vector.broadcast %22 : vector<1x32xf32> to vector<8x32xf32>
    %24 = arith.addf %21, %23 : vector<8x32xf32>
    %25 = arith.truncf %24 : vector<8x32xf32> to vector<8x32xbf16>
    %c0_9 = arith.constant 0 : index
    %c0_10 = arith.constant 0 : index
    %26 = vector.load %arg4[%c0_9, %c0_10] : memref<32x128xbf16, #tpu.memory_space<vmem>>, vector<32x128xbf16>
    %cst_11 = arith.constant dense<0.000000e+00> : vector<8x128xf32>
    %27 = tpu.matmul %25, %26, %cst_11 {dimension_numbers = #tpu.dot_dimension_numbers<[1], [0], [0], [1], [0, 0, 1, 1], [], []>} : vector<8x32xbf16>, vector<32x128xbf16>, vector<8x128xf32> -> vector<8x128xf32>
    %c0_12 = arith.constant 0 : index
    %c0_13 = arith.constant 0 : index
    %28 = vector.load %arg5[%c0_12, %c0_13] : memref<1x128xf32, #tpu.memory_space<vmem>>, vector<1x128xf32>
    %29 = vector.broadcast %28 : vector<1x128xf32> to vector<8x128xf32>
    %30 = arith.addf %27, %29 : vector<8x128xf32>
    %31 = math.tanh %30 : vector<8x128xf32>
    %32 = arith.truncf %31 : vector<8x128xf32> to vector<8x128xbf16>
    %c0_14 = arith.constant 0 : index
    %c0_15 = arith.constant 0 : index
    %33 = vector.load %arg6[%c0_14, %c0_15] : memref<128x128xbf16, #tpu.memory_space<vmem>>, vector<128x128xbf16>
    %cst_16 = arith.constant dense<0.000000e+00> : vector<8x128xf32>
    %34 = tpu.matmul %32, %33, %cst_16 {dimension_numbers = #tpu.dot_dimension_numbers<[1], [0], [0], [1], [0, 0, 1, 1], [], []>} : vector<8x128xbf16>, vector<128x128xbf16>, vector<8x128xf32> -> vector<8x128xf32>
    %c0_17 = arith.constant 0 : index
    %c0_18 = arith.constant 0 : index
    %35 = vector.load %arg7[%c0_17, %c0_18] : memref<1x128xf32, #tpu.memory_space<vmem>>, vector<1x128xf32>
    %36 = vector.broadcast %35 : vector<1x128xf32> to vector<8x128xf32>
    %37 = arith.addf %34, %36 : vector<8x128xf32>
    %38 = arith.truncf %0 : vector<8x32xf32> to vector<8x32xbf16>
    %c0_19 = arith.constant 0 : index
    %c0_20 = arith.constant 0 : index
    %39 = vector.load %arg8[%c0_19, %c0_20] : memref<32x128xbf16, #tpu.memory_space<vmem>>, vector<32x128xbf16>
    %cst_21 = arith.constant dense<0.000000e+00> : vector<8x128xf32>
    %40 = tpu.matmul %38, %39, %cst_21 {dimension_numbers = #tpu.dot_dimension_numbers<[1], [0], [0], [1], [0, 0, 1, 1], [], []>} : vector<8x32xbf16>, vector<32x128xbf16>, vector<8x128xf32> -> vector<8x128xf32>
    %c0_22 = arith.constant 0 : index
    %c0_23 = arith.constant 0 : index
    %41 = vector.load %arg9[%c0_22, %c0_23] : memref<1x128xf32, #tpu.memory_space<vmem>>, vector<1x128xf32>
    %42 = vector.broadcast %41 : vector<1x128xf32> to vector<8x128xf32>
    %43 = arith.addf %40, %42 : vector<8x128xf32>
    %44 = arith.addf %43, %37 : vector<8x128xf32>
    %c0_24 = arith.constant 0 : index
    %c0_25 = arith.constant 0 : index
    %45 = vector.load %arg10[%c0_24, %c0_25] : memref<8x128xf32, #tpu.memory_space<vmem>>, vector<8x128xf32>
    tpu.vector_store %arg10[%c0_24, %c0_25], %44 {strides = array<i32>} : memref<8x128xf32, #tpu.memory_space<vmem>>, vector<8x128xf32>,
    return
  }
  func.func @transform_0(%arg0: i32) -> (i32, i32) {
    %c0_i32 = arith.constant 0 : i32
    %c0_i32_0 = arith.constant 0 : i32
    return %arg0, %c0_i32 : i32, i32
  }
  func.func @transform_1(%arg0: i32) -> (i32, i32) {
    %c0_i32 = arith.constant 0 : i32
    %c0_i32_0 = arith.constant 0 : i32
    %c0_i32_1 = arith.constant 0 : i32
    return %c0_i32, %c0_i32_0 : i32, i32
  }
  func.func @transform_2(%arg0: i32) -> (i32, i32) {
    %c0_i32 = arith.constant 0 : i32
    %c0_i32_0 = arith.constant 0 : i32
    %c0_i32_1 = arith.constant 0 : i32
    return %c0_i32, %c0_i32_0 : i32, i32
  }
  func.func @transform_3(%arg0: i32) -> (i32, i32) {
    %c0_i32 = arith.constant 0 : i32
    %c0_i32_0 = arith.constant 0 : i32
    %c0_i32_1 = arith.constant 0 : i32
    return %c0_i32, %c0_i32_0 : i32, i32
  }
  func.func @transform_4(%arg0: i32) -> (i32, i32) {
    %c0_i32 = arith.constant 0 : i32
    %c0_i32_0 = arith.constant 0 : i32
    %c0_i32_1 = arith.constant 0 : i32
    return %c0_i32, %c0_i32_0 : i32, i32
  }
  func.func @transform_5(%arg0: i32) -> (i32, i32) {
    %c0_i32 = arith.constant 0 : i32
    %c0_i32_0 = arith.constant 0 : i32
    %c0_i32_1 = arith.constant 0 : i32
    return %c0_i32, %c0_i32_0 : i32, i32
  }
  func.func @transform_6(%arg0: i32) -> (i32, i32) {
    %c0_i32 = arith.constant 0 : i32
    %c0_i32_0 = arith.constant 0 : i32
    %c0_i32_1 = arith.constant 0 : i32
    return %c0_i32, %c0_i32_0 : i32, i32
  }
  func.func @transform_7(%arg0: i32) -> (i32, i32) {
    %c0_i32 = arith.constant 0 : i32
    %c0_i32_0 = arith.constant 0 : i32
    %c0_i32_1 = arith.constant 0 : i32
    return %c0_i32, %c0_i32_0 : i32, i32
  }
  func.func @transform_8(%arg0: i32) -> (i32, i32) {
    %c0_i32 = arith.constant 0 : i32
    %c0_i32_0 = arith.constant 0 : i32
    %c0_i32_1 = arith.constant 0 : i32
    return %c0_i32, %c0_i32_0 : i32, i32
  }
  func.func @transform_9(%arg0: i32) -> (i32, i32) {
    %c0_i32 = arith.constant 0 : i32
    %c0_i32_0 = arith.constant 0 : i32
    return %arg0, %c0_i32 : i32, i32
  }
}

</mosaic_0001>

<bundles_post_ra>
// kernel: tpu_custom_call.1
= control target key start
LH: loop header
LB: loop body
LE: loop exit
PB: predicated region body
PF: predicated region fallthrough
CT: control target
= control target key end

     0   :  { %s1933_s0 = inlined_call_operand.hbm [shape: f32[16,32], index: 0, kind: input, shape index: {}]   ;;  %s1934_s1 = inlined_call_operand.hbm [shape: f32[1,32], index: 1, kind: input, shape index: {}]   ;;  %s1935_s2 = inlined_call_operand.hbm [shape: f32[1,32], index: 2, kind: input, shape index: {}]   ;;  %s1936_s3 = inlined_call_operand.hbm [shape: bf16[32,128], index: 3, kind: input, shape index: {}]   ;;  %s1937_s4 = inlined_call_operand.hbm [shape: f32[1,128], index: 4, kind: input, shape index: {}]   ;;  %s1938_s5 = inlined_call_operand.hbm [shape: bf16[128,128], index: 5, kind: input, shape index: {}]   ;;  %s1939_s6 = inlined_call_operand.hbm [shape: f32[1,128], index: 6, kind: input, shape index: {}]   ;;  %s1940_s7 = inlined_call_operand.hbm [shape: bf16[32,128], index: 7, kind: input, shape index: {}]   ;;  %s1941_s8 = inlined_call_operand.hbm [shape: f32[1,128], index: 8, kind: input, shape index: {}]   ;;  %s1942_s9 = inlined_call_operand.hbm [shape: f32[16,128], index: 9, kind: output, shape index: {}]  }
   0x1   :  { %1946 = sst [smem:[#allocation24_spill]] %s1934_s1 }
   0x2   :  { %1947 = sst [smem:[#allocation25_spill]] %s1936_s3 }
   0x3   :  { %14 = vsyncpa [#allocation3], 0 }
   0x4   :  { %16 = vsyncpa [#allocation3 + $0x1], 0 }
   0x5   :  { %17 = vsyncpa [#allocation6], 0 }
   0x6   :  { %18 = vsyncpa [#allocation9], 0 }
   0x7   :  { %19 = vsyncpa [#allocation12], 0 }
   0x8   :  { %20 = vsyncpa [#allocation15], 0 }
   0x9   :  { %21 = vsyncpa [#allocation4], 0 }
   0xa   :  { %23 = vsyncpa [#allocation4 + $0x1], 0  ;;  %s1546_s30 = smov 0   ;;  %s1548_s10 = smov 0  }
   0xb   :  { %s1550_s11 = smov 0   ;;  %s1552_s12 = smov 0  }
   0xc LB: > { %s1482_s13 = smov [#allocation5]   ;;  %s1567_s15 = sadd.s32 4294967295, %s1480_s12   ;;  %s1480_s12 = sphi %s1552_s12, %s1974_s12   ;;  %s1476_s11 = sphi %s1550_s11, %s1973_s11   ;;  %s1472_s10 = sphi %s1548_s10, %s1972_s10   ;;  %s1468_s30 = sphi %s1546_s30, %s1971_s30  }
   0xd   : > { %s267_s14 = sshll.u32 %s1482_s13, 4  ;;  %p897_p0 = scmp.ge.s32.totalorder %s1480_s12, 1  ;;  %s1572_s14 = int_to_ptr.vmem [resolvable:$true] %s267_s14 }
   0xe   : > { %p1943_p1 = scmp.eq.s32.totalorder %s1567_s15, 0  ;;  %p254_p2 = scmp.lt.s32.totalorder %s1480_s12, 3 }
   0xf   : > { %s1483_s17 = smov [#allocation8]   ;;  %s1484_s20 = smov [#allocation11]  }
  0x10   : > { %p1574_p3 = pnand %p897_p0, %p254_p2  ;;  %s288_s18 = sshll.u32 %s1483_s17, 4  ;;  %s1581_s18 = int_to_ptr.vmem [resolvable:$true] %s288_s18 }
  0x11   : > { %s312_s21 = sshll.u32 %s1484_s20, 4  ;;  %s1950_s1 = sld [smem:[#allocation24_spill]]  ;;  %s1589_s21 = int_to_ptr.vmem [resolvable:$true] %s312_s21 }
  0x12   : > { %s1948_s16 = scalar_select %p1574_p3, 1, 0 }
  0x13   : > { %p1033_p5 = pneg %p1574_p3 }
  0x15   : > { %p1585_p6 = pnand %p1033_p5, %p1943_p1 }
  0x17   : > { %s1144_s24 = scalar_lea.hbm %s1950_s1, 16  ;;  %p1599_p8 = pneg %p1585_p6 }
  0x18   : > { %p1145_p7 = scmp.ne.s32.totalorder %s1950_s1, %s1144_s24  ;;  %p1151_p11 = scmp.lt.u32.totalorder %s1144_s24, %s1950_s1 }
  0x1a   : > { %p1147_p9 = pnand %p1599_p8, %p1145_p7 }
  0x1c   : > { %p1148_p10 = pneg %p1147_p9 }
  0x1e   : > { %p1153_p12 = pnand %p1151_p11, %p1148_p10 }
  0x20   : > { %1156 = shalt.err (!%p1153_p12)
}
  0x21   : > { %s1157_s13 = scalar_lea.vmem %s1572_s14, 16  ;;  %s1164_s17 = scalar_lea.vmem %s1572_s14, 32 }
  0x22   : > { %p1158_p13 = scmp.ne.s32.totalorder %s1572_s14, %s1157_s13  ;;  %p1165_p5 = scmp.lt.s32.totalorder %s1572_s14, %s1572_s14 }
  0x23   : > { %p1166_p7 = scmp.lt.s32.totalorder %s1164_s17, %s1157_s13 }
  0x24   : > { %p1160_p0 = pnand %p1158_p13, %p1599_p8 }
  0x25   : > { %p1167_p9 = por %p1166_p7, %p1165_p5 }
  0x26   : > { %p1161_p2 = pneg %p1160_p0 }
  0x28   : > { %p1168_p4 = pnand %p1167_p9, %p1161_p2 }
  0x2a   : > { %1171 = shalt.err (!%p1168_p4)
}
  0x2b   : > { %1036 = dma.hbm_to_vmem [thread:$0]  (!%p1585_p6), %s1950_s1, 16, %s1572_s14, [#allocation6]  }
  0x2c   : > { %s1952_s3 = sld [smem:[#allocation25_spill]] }
  0x32   : > { %s1172_s25 = scalar_lea.hbm %s1952_s3, 256 }
  0x33   : > { %p1173_p10 = scmp.ne.s32.totalorder %s1952_s3, %s1172_s25  ;;  %p1179_p4 = scmp.lt.u32.totalorder %s1172_s25, %s1952_s3 }
  0x35   : > { %p1175_p11 = pnand %p1173_p10, %p1599_p8 }
  0x37   : > { %p1176_p12 = pneg %p1175_p11 }
  0x39   : > { %p1181_p13 = pnand %p1179_p4, %p1176_p12 }
  0x3b   : > { %1184 = shalt.err (!%p1181_p13)
}
  0x3c   : > { %s1185_s14 = scalar_lea.vmem %s1581_s18, 256  ;;  %p1193_p7 = scmp.lt.s32.totalorder %s1581_s18, %s1581_s18 }
  0x3d   : > { %p1186_p0 = scmp.ne.s32.totalorder %s1581_s18, %s1185_s14  ;;  %p1194_p9 = scmp.lt.s32.totalorder %s1185_s14, %s1185_s14 }
  0x3f   : > { %p1188_p2 = pnand %p1186_p0, %p1599_p8  ;;  %p1195_p10 = por %p1194_p9, %p1193_p7 }
  0x41   : > { %p1189_p5 = pneg %p1188_p2 }
  0x43   : > { %p1196_p11 = pnand %p1195_p10, %p1189_p5 }
  0x45   : > { %1199 = shalt.err (!%p1196_p11)
}
  0x46   : > { %s1485_s17 = smov 64   ;;  %s1486_s20 = smov 4  }
  0x47   : > { %1042 = dma.hbm_to_vmem [thread:$0]  (!%p1585_p6), %s1952_s3, 256, %s1581_s18, [#allocation9], %s1485_s17, %s1485_s17, %s1486_s20  }
  0x48   : > { %s1200_s26 = scalar_lea.hbm %s1938_s5, 1024 }
  0x49   : > { %p1201_p12 = scmp.ne.s32.totalorder %s1938_s5, %s1200_s26  ;;  %p1207_p0 = scmp.lt.u32.totalorder %s1200_s26, %s1938_s5 }
  0x4b   : > { %p1203_p4 = pnand %p1201_p12, %p1599_p8 }
  0x4d   : > { %p1204_p13 = pneg %p1203_p4 }
  0x4f   : > { %p1209_p2 = pnand %p1207_p0, %p1204_p13 }
  0x51   : > { %1212 = shalt.err (!%p1209_p2)
}
  0x52   : > { %s1213_s18 = scalar_lea.vmem %s1589_s21, 1024  ;;  %p1221_p10 = scmp.lt.s32.totalorder %s1589_s21, %s1589_s21 }
  0x53   : > { %p1214_p5 = scmp.ne.s32.totalorder %s1589_s21, %s1213_s18  ;;  %p1222_p11 = scmp.lt.s32.totalorder %s1213_s18, %s1213_s18 }
  0x55   : > { %p1216_p7 = pnand %p1214_p5, %p1599_p8  ;;  %p1223_p12 = por %p1222_p11, %p1221_p10 }
  0x57   : > { %p1217_p9 = pneg %p1216_p7 }
  0x59   : > { %p1224_p4 = pnand %p1223_p12, %p1217_p9 }
  0x5b   : > { %1227 = shalt.err (!%p1224_p4)
}
  0x5c   : > { %1048 = dma.hbm_to_vmem [thread:$0]  (!%p1585_p6), %s1938_s5, 1024, %s1589_s21, [#allocation12], %s1485_s17, %s1485_s17, %s1486_s20  }
  0x5d   : > { %s1487_s24 = smov [#allocation14]   ;;  %s1488_s26 = smov [#allocation7]  }
  0x5e   : > { %s336_s25 = sshll.u32 %s1487_s24, 4  ;;  %s278_s28 = sshll.u32 %s1488_s26, 4  ;;  %s337_s25 = int_to_ptr.vmem [resolvable:$true] %s336_s25  ;;  %s279_s28 = int_to_ptr.vmem [resolvable:$true] %s278_s28 }
  0x5f   : > { %s1228_s14 = scalar_lea.hbm %s1940_s7, 256 }
  0x60   : > { %p1229_p13 = scmp.ne.s32.totalorder %s1940_s7, %s1228_s14  ;;  %p1235_p5 = scmp.lt.u32.totalorder %s1228_s14, %s1940_s7 }
  0x62   : > { %p1231_p0 = pnand %p1229_p13, %p1599_p8 }
  0x64   : > { %p1232_p2 = pneg %p1231_p0 }
  0x66   : > { %p1237_p7 = pnand %p1235_p5, %p1232_p2 }
  0x68   : > { %1240 = shalt.err (!%p1237_p7)
}
  0x69   : > { %s1241_s21 = scalar_lea.vmem %s337_s25, 256  ;;  %p1249_p12 = scmp.lt.s32.totalorder %s337_s25, %s337_s25 }
  0x6a   : > { %p1242_p9 = scmp.ne.s32.totalorder %s337_s25, %s1241_s21  ;;  %p1250_p4 = scmp.lt.s32.totalorder %s1241_s21, %s1241_s21 }
  0x6c   : > { %p1244_p10 = pnand %p1242_p9, %p1599_p8  ;;  %p1251_p1 = por %p1250_p4, %p1249_p12 }
  0x6e   : > { %p1245_p11 = pneg %p1244_p10 }
  0x70   : > { %p1252_p3 = pnand %p1251_p1, %p1245_p11 }
  0x72   : > { %1255 = shalt.err (!%p1252_p3)
}
  0x73   : > { %1054 = dma.hbm_to_vmem [thread:$0]  (!%p1585_p6), %s1940_s7, 256, %s337_s25, [#allocation15], %s1485_s17, %s1485_s17, %s1486_s20  }
  0x74   : > { %s1256_s26 = scalar_lea.hbm %s1935_s2, 16 }
  0x75   : > { %p1257_p1 = scmp.ne.s32.totalorder %s1935_s2, %s1256_s26  ;;  %p1263_p0 = scmp.lt.u32.totalorder %s1256_s26, %s1935_s2 }
  0x77   : > { %p1259_p3 = pnand %p1257_p1, %p1599_p8 }
  0x79   : > { %p1260_p13 = pneg %p1259_p3 }
  0x7b   : > { %p1265_p2 = pnand %p1263_p0, %p1260_p13 }
  0x7d   : > { %1268 = shalt.err (!%p1265_p2)
}
  0x7e   : > { %s1269_s22 = scalar_lea.vmem %s279_s28, 16  ;;  %s1276_s17 = scalar_lea.vmem %s279_s28, 32 }
  0x7f   : > { %p1270_p5 = scmp.ne.s32.totalorder %s279_s28, %s1269_s22  ;;  %p1277_p10 = scmp.lt.s32.totalorder %s279_s28, %s279_s28 }
  0x80   : > { %p1278_p11 = scmp.lt.s32.totalorder %s1276_s17, %s1269_s22 }
  0x81   : > { %p1272_p7 = pnand %p1270_p5, %p1599_p8 }
  0x82   : > { %p1279_p12 = por %p1278_p11, %p1277_p10 }
  0x83   : > { %p1273_p9 = pneg %p1272_p7 }
  0x85   : > { %p1280_p4 = pnand %p1279_p12, %p1273_p9 }
  0x87   : > { %1283 = shalt.err (!%p1280_p4)
}
  0x88   : > { %1039 = dma.hbm_to_vmem [thread:$0]  (!%p1585_p6), %s1935_s2, 16, %s279_s28, [#allocation6]  }
  0x89   : > { %s1489_s21 = smov [#allocation10]   ;;  %s1490_s3 = smov [#allocation13]  }
  0x8a   : > { %s302_s1 = sshll.u32 %s1489_s21, 4  ;;  %s326_s23 = sshll.u32 %s1490_s3, 4  ;;  %s303_s1 = int_to_ptr.vmem [resolvable:$true] %s302_s1  ;;  %s327_s23 = int_to_ptr.vmem [resolvable:$true] %s326_s23 }
  0x8b   : > { %s1284_s29 = scalar_lea.hbm %s1937_s4, 16 }
  0x8c   : > { %p1285_p1 = scmp.ne.s32.totalorder %s1937_s4, %s1284_s29  ;;  %p1291_p0 = scmp.lt.u32.totalorder %s1284_s29, %s1937_s4 }
  0x8e   : > { %p1287_p3 = pnand %p1285_p1, %p1599_p8 }
  0x90   : > { %p1288_p13 = pneg %p1287_p3 }
  0x92   : > { %p1293_p2 = pnand %p1291_p0, %p1288_p13 }
  0x94   : > { %1296 = shalt.err (!%p1293_p2)
}
  0x95   : > { %s1297_s28 = scalar_lea.vmem %s303_s1, 16  ;;  %s1304_s17 = scalar_lea.vmem %s303_s1, 32 }
  0x96   : > { %p1298_p5 = scmp.ne.s32.totalorder %s303_s1, %s1297_s28  ;;  %p1305_p10 = scmp.lt.s32.totalorder %s303_s1, %s303_s1 }
  0x97   : > { %p1306_p11 = scmp.lt.s32.totalorder %s1304_s17, %s1297_s28 }
  0x98   : > { %p1300_p7 = pnand %p1298_p5, %p1599_p8 }
  0x99   : > { %p1307_p12 = por %p1306_p11, %p1305_p10 }
  0x9a   : > { %p1301_p9 = pneg %p1300_p7 }
  0x9c   : > { %p1308_p4 = pnand %p1307_p12, %p1301_p9 }
  0x9e   : > { %1311 = shalt.err (!%p1308_p4)
}
  0x9f   : > { %1045 = dma.hbm_to_vmem [thread:$0]  (!%p1585_p6), %s1937_s4, 16, %s303_s1, [#allocation9]  }
  0xa0   : > { %s1312_s24 = scalar_lea.hbm %s1939_s6, 16 }
  0xa1   : > { %p1313_p1 = scmp.ne.s32.totalorder %s1939_s6, %s1312_s24  ;;  %p1319_p0 = scmp.lt.u32.totalorder %s1312_s24, %s1939_s6 }
  0xa3   : > { %p1315_p3 = pnand %p1313_p1, %p1599_p8 }
  0xa5   : > { %p1316_p13 = pneg %p1315_p3 }
  0xa7   : > { %p1321_p2 = pnand %p1319_p0, %p1316_p13 }
  0xa9   : > { %1324 = shalt.err (!%p1321_p2)
}
  0xaa   : > { %s1325_s18 = scalar_lea.vmem %s327_s23, 16  ;;  %s1332_s1 = scalar_lea.vmem %s327_s23, 32 }
  0xab   : > { %p1326_p5 = scmp.ne.s32.totalorder %s327_s23, %s1325_s18  ;;  %p1333_p10 = scmp.lt.s32.totalorder %s327_s23, %s327_s23 }
  0xac   : > { %p1334_p11 = scmp.lt.s32.totalorder %s1332_s1, %s1325_s18 }
  0xad   : > { %p1328_p7 = pnand %p1326_p5, %p1599_p8 }
  0xae   : > { %p1335_p12 = por %p1334_p11, %p1333_p10 }
  0xaf   : > { %p1329_p9 = pneg %p1328_p7 }
  0xb1   : > { %p1336_p4 = pnand %p1335_p12, %p1329_p9 }
  0xb3   : > { %1339 = shalt.err (!%p1336_p4)
}
  0xb4   : > { %1051 = dma.hbm_to_vmem [thread:$0]  (!%p1585_p6), %s1939_s6, 16, %s327_s23, [#allocation12]  }
  0xb5   : > { %s1491_s17 = smov [#allocation16]   ;;  %s1340_s3 = scalar_lea.hbm %s1941_s8, 16 }
  0xb6   : > { %s350_s20 = sshll.u32 %s1491_s17, 4  ;;  %p1341_p1 = scmp.ne.s32.totalorder %s1941_s8, %s1340_s3  ;;  %s351_s20 = int_to_ptr.vmem [resolvable:$true] %s350_s20 }
  0xb7   : > { %p1347_p0 = scmp.lt.u32.totalorder %s1340_s3, %s1941_s8 }
  0xb8   : > { %p1343_p3 = pnand %p1341_p1, %p1599_p8 }
  0xba   : > { %p1344_p13 = pneg %p1343_p3 }
  0xbc   : > { %p1349_p2 = pnand %p1347_p0, %p1344_p13 }
  0xbe   : > { %1352 = shalt.err (!%p1349_p2)
}
  0xbf   : > { %s1353_s23 = scalar_lea.vmem %s351_s20, 16  ;;  %s1360_s14 = scalar_lea.vmem %s351_s20, 32 }
  0xc0   : > { %p1354_p5 = scmp.ne.s32.totalorder %s351_s20, %s1353_s23  ;;  %p1361_p10 = scmp.lt.s32.totalorder %s351_s20, %s351_s20 }
  0xc1   : > { %p1362_p11 = scmp.lt.s32.totalorder %s1360_s14, %s1353_s23 }
  0xc2   : > { %p1356_p7 = pnand %p1354_p5, %p1599_p8 }
  0xc3   : > { %p1363_p12 = por %p1362_p11, %p1361_p10 }
  0xc4   : > { %p1357_p9 = pneg %p1356_p7 }
  0xc6   : > { %p1364_p4 = pnand %p1363_p12, %p1357_p9 }
  0xc8   : > { %1367 = shalt.err (!%p1364_p4)
}
  0xc9   : > { %1057 = dma.hbm_to_vmem [thread:$0]  (!%p1585_p6), %s1941_s8, 16, %s351_s20, [#allocation15]  }
  0xca   : > { %s896_s27 = sadd.s32 4294967294, %s1480_s12   ;;  %s1768_s19 = sadd.s32 1, %s1480_s12  }
  0xcb   : > { %s33_s22 = ssub.s32 %s1480_s12, %s1768_s19  ;;  %s36_s28 = sadd.s32 1, %s1476_s11 }
  0xcc   : > { %p34_p8 = scmp.eq.s32.totalorder %s33_s22, 0  ;;  %p43_p1 = scmp.ne.s32.totalorder %s1476_s11, %s1472_s10 }
  0xcd   : > { %p44_p3 = scmp.eq.s32.totalorder %s1480_s12, 0  ;;  %p49_p13 = scmp.ne.s32.totalorder %s1472_s10, %s1468_s30 }
  0xce   : > { %s1779_s17 = scalar_select %p34_p8, %s1476_s11, %s36_s28  }
  0xcf   : > { %p1781_p0 = por %p44_p3, %p43_p1  ;;  %p1954_p2 = scmp.eq.s32.totalorder %s1567_s15, 0 }
  0xd0   : > { %p241_p5 = scmp.eq.s32.totalorder %s1567_s15, 1  ;;  %p247_p7 = scmp.eq.s32.totalorder %s896_s27, 1 }
  0xd1   : > { %p1787_p6 = por %p1954_p2, %p49_p13  ;;  %p1074_p9 = scmp.lt.s32.totalorder %s1480_s12, 2 }
  0xd2   : > { %s361_s21 = sand.u32 1, %s1476_s11   ;;  %p1794_p10 = por %p241_p5, %p43_p1 }
  0xd3   : > { %p1798_p11 = por %p247_p7, %p49_p13  ;;  %s907_s26 = sshll.u32 %s361_s21, 3 }
  0xd4   : > { %s1956_s3 = scalar_select %p1794_p10, 1, 0 }
  0xd5   : > { %s1957_s24 = scalar_select %p1798_p11, 1, 0 }
  0xd6   : > { %s908_s29 = sshll.u32 %s1480_s12, 7  ;;  %s365_s18 = scalar_lea.vmem [#allocation2], %s907_s26 }
  0xd7   : > { %s1806_s14 = scalar_lea.hbm %s1933_s0, %s908_s29  ;;  %s372_s1 = sshll.u32 %s365_s18, 4  ;;  %s1808_s1 = int_to_ptr.vmem [resolvable:$true] %s372_s1 }
  0xd8   : > { %p1812_p12 = pnand %p1074_p9, %p1781_p0  ;;  %s362_s22 = scalar_lea.sflag [#allocation3], %s361_s21 }
  0xd9   : > { %s1368_s28 = scalar_lea.hbm %s1806_s14, 128  ;;  %s1373_s13 = scalar_lea.hbm %s1933_s0, 256 }
  0xda   : > { %p1369_p4 = scmp.ne.s32.totalorder %s1806_s14, %s1368_s28  ;;  %p1370_p8 = pneg %p1812_p12 }
  0xdb   : > { %p1374_p13 = scmp.lt.u32.totalorder %s1806_s14, %s1933_s0  ;;  %p1375_p0 = scmp.lt.u32.totalorder %s1373_s13, %s1368_s28 }
  0xdc   : > { %p1371_p1 = pnand %p1370_p8, %p1369_p4  ;;  %p1377_p5 = scmp.lt.u32.totalorder %s1368_s28, %s1806_s14 }
  0xdd   : > { %p1376_p2 = por %p1375_p0, %p1374_p13 }
  0xde   : > { %p1372_p3 = pneg %p1371_p1 }
  0xdf   : > { %p1378_p7 = por %p1377_p5, %p1376_p2 }
  0xe1   : > { %p1379_p9 = pnand %p1378_p7, %p1372_p3 }
  0xe3   : > { %1382 = shalt.err (!%p1379_p9)
}
  0xe4   : > { %s1383_s21 = scalar_lea.vmem %s1808_s1, 128  ;;  %s1492_s18 = smov [#allocation2]  }
  0xe5   : > { %p1384_p4 = scmp.ne.s32.totalorder %s1808_s1, %s1383_s21  ;;  %s1388_s26 = sshll.u32 %s1492_s18, 4  ;;  %s1389_s26 = int_to_ptr.vmem [resolvable:$false] %s1388_s26 }
  0xe6   : > { %s1390_s29 = scalar_lea.vmem %s1389_s26, 256  ;;  %p1391_p10 = scmp.lt.s32.totalorder %s1808_s1, %s1389_s26 }
  0xe7   : > { %p1386_p1 = pnand %p1384_p4, %p1370_p8  ;;  %p1392_p13 = scmp.lt.s32.totalorder %s1390_s29, %s1383_s21 }
  0xe9   : > { %p1387_p11 = pneg %p1386_p1  ;;  %p1393_p0 = por %p1392_p13, %p1391_p10 }
  0xeb   : > { %p1394_p2 = pnand %p1393_p0, %p1387_p11 }
  0xed   : > { %1397 = shalt.err (!%p1394_p2)
}
  0xee   : > { %1061 = dma.hbm_to_vmem [thread:$0]  (!%p1812_p12), %s1806_s14, 128, %s1808_s1, %s362_s22  }
  0xef   : > { %p1959_p3 = scmp.ne.s32.totalorder %s1948_s16, 0 }
  0xf0   : > { %s1844_s28 = sand.u32 (!%p1959_p3), 1, %s1472_s10  }
  0xf1   : > { %381 = sbr.rel (%p1959_p3) target bundleno = 1037 (0x40d), region = 56  ;;  %s910_s13 = sshll.u32 (!%p1959_p3), %s1844_s28, 3 }
  0xf2   : > { %s384_s25 = scalar_lea.sflag (!%p1959_p3), [#allocation3], %s1844_s28  ;;  %s387_s23 = scalar_lea.vmem (!%p1959_p3), [#allocation2], %s910_s13 }
  0xf8   : > { %1443 = dma.done.wait (%p1787_p6), %s384_s25, 128  }
  0xf9   : > { %1445 = vsyncadd (%p1787_p6), %s384_s25, 4294967168  ;;  %p1960_p10 = scmp.eq.s32.totalorder %s1567_s15, 0 }
  0xfb   : > { %1447 = dma.done.wait (%p1960_p10), [#allocation6], 32   ;;  %p1961_p11 = pmov %p1960_p10 }
  0xfc   : > { %p1962_p12 = pmov %p1960_p10 }
  0xfd   : > { %1449 = vsyncadd (%p1961_p11), [#allocation6], 4294967264 }
  0xfe   : > { %1451 = dma.done.wait (%p1962_p12), [#allocation9], 272   ;;  %p1963_p8 = pmov %p1960_p10 }
 0x100   : > { %1453 = vsyncadd (%p1963_p8), [#allocation9], 4294967024  ;;  %p1964_p5 = pmov %p1963_p8 }
 0x102   : > { %1455 = dma.done.wait (%p1964_p5), [#allocation12], 1040   ;;  %p1965_p7 = pmov %p1964_p5 }
 0x103   : > { %p1966_p6 = pmov %p1964_p5 }
 0x104   : > { %1457 = vsyncadd (%p1965_p7), [#allocation12], 4294966256 }
 0x105   : > { %1459 = dma.done.wait (%p1966_p6), [#allocation15], 272   ;;  %p1967_p9 = pmov %p1964_p5 }
 0x106   : > { %vm456_vm0 = vcmask 261120   ;;  %v1870_v0 = vld [vmem:[%s387_s23] sm:$0xff]  ;;  %v1128_v7 = vld [vmem:[#allocation8] sm:$0xff]   ;;  %v1493_v8 = vmov 0.0   ;;  %vm1494_vm1 = vmmov 0   ;;  %s940_s16 = sshll.u32 %s1567_s15, 7 }
 0x107   : > { %1461 = vsyncadd (%p1967_p9), [#allocation15], 4294967024  ;;  %v457_v1 = vsel %vm456_vm0, %v1870_v0, 0.0  ;;  %958 = vmatprep.subr.bf16.mxu0 %v1493_v8  ;;  %966 = vmatprep.subr.bf16.mxu1 %v1493_v8  ;;  %v1129_v9 = vld [vmem:[#allocation8 + $0x8] sm:$0xff]   ;;  %v1130_v10 = vld [vmem:[#allocation11] sm:$0xff]   ;;  %v667_v30 = vpack.c.bf16 %v1870_v0, %v1870_v0  ;;  %s453_s20 = scalar_lea.vmem [#allocation17], %s910_s13  ;;  %s1889_s22 = scalar_lea.hbm %s1942_s9, %s940_s16 }
 0x108   : > { %458 = vadd.xlane.f32.xlu0 %v457_v1  ;;  %959 = vmatpush3.bf16.msra.mxu0 %v1128_v7  ;;  %v1131_v11 = vld [vmem:[#allocation11 + $0x8] sm:$0xff]   ;;  %v1132_v12 = vld [vmem:[#allocation11 + $0x10] sm:$0xff]   ;;  %v1133_v13 = vld [vmem:[#allocation11 + $0x18] sm:$0xff]   ;;  %s750_s14 = sshll.u32 %s453_s20, 4  ;;  %s737_s21 = scalar_lea.sflag [#allocation4], %s1844_s28  ;;  %s1891_s14 = int_to_ptr.vmem [resolvable:$true] %s750_s14 }
 0x109   : > { %962 = vmatprep.mubr.msk.bf16.mxu0 %vm1494_vm1, %v1493_v8  ;;  %960 = vmatprep.subr.bf16.mxu0 %v1493_v8  ;;  %v920_v18 = vld [vmem:[#allocation5] ss:$0 sm:$0xff]  ;;  %v921_v20 = vld [vmem:[#allocation7] ss:$0 sm:$0xff]  ;;  %v1134_v24 = vld [vmem:[#allocation11 + $0x20] sm:$0xff]   ;;  %s1398_s18 = scalar_lea.vmem %s1891_s14, 128 }
 0x10a   : > { %982 = vmatprep.mubr.msk.bf16.mxu1 %vm1494_vm1, %v1493_v8  ;;  %967 = vmatpush3.bf16.msra.mxu1 %v1130_v10  ;;  %v1135_v25 = vld [vmem:[#allocation11 + $0x28] sm:$0xff]   ;;  %v1136_v26 = vld [vmem:[#allocation11 + $0x30] sm:$0xff]   ;;  %v1138_v28 = vld [vmem:[#allocation11 + $0x38] sm:$0xff]   ;;  %p1399_p4 = scmp.ne.s32.totalorder %s1891_s14, %s1398_s18  ;;  %p1968_p1 = scmp.ne.s32.totalorder %s1956_s3, 0 }
 0x10b   : > { %968 = vmatprep.subr.bf16.mxu1 %v1493_v8  ;;  %v1137_v27 = vld [vmem:[#allocation14] sm:$0xff]   ;;  %v1139_v29 = vld [vmem:[#allocation14 + $0x8] sm:$0xff]   ;;  %v922_v31 = vld [vmem:[#allocation10] ss:$0 sm:$0xff]  ;;  %s1495_s15 = smov [#allocation17]  }
 0x10c   : > { %961 = vmatpush3.bf16.msra.mxu0 %v1129_v9  ;;  %v926_v43 = vld [vmem:[#allocation13] ss:$0 sm:$0xff]  ;;  %v935_v45 = vld [vmem:[#allocation16] ss:$0 sm:$0xff]  ;;  %p1400_p13 = pnand %p1399_p4, %p1968_p1  ;;  %s1402_s26 = sshll.u32 %s1495_s15, 4  ;;  %s1403_s26 = int_to_ptr.vmem [resolvable:$false] %s1402_s26 }
 0x10d   : > { %986 = vmatprep.subr.bf16.mxu0 %v1493_v8  ;;  %s1404_s29 = scalar_lea.vmem %s1403_s26, 256  ;;  %p1405_p2 = scmp.lt.s32.totalorder %s1891_s14, %s1403_s26 }
 0x10e   : > { %969 = vmatpush3.bf16.msra.mxu1 %v1131_v11  ;;  %p1401_p0 = pneg %p1400_p13  ;;  %p1406_p3 = scmp.lt.s32.totalorder %s1404_s29, %s1398_s18 }
 0x10f   : > { %970 = vmatprep.subr.bf16.mxu1 %v1493_v8 }
 0x110   : > { %p1407_p10 = por %p1406_p3, %p1405_p2 }
 0x112   : > { %971 = vmatpush3.bf16.msra.mxu1 %v1132_v12  ;;  %p1408_p11 = pnand %p1407_p10, %p1401_p0 }
 0x113   : > { %972 = vmatprep.subr.bf16.mxu1 %v1493_v8 }
 0x116   : > { %973 = vmatpush3.bf16.msra.mxu1 %v1133_v13 }
 0x117   : > { %974 = vmatprep.subr.bf16.mxu1 %v1493_v8 }
 0x11a   : > { %975 = vmatpush3.bf16.msra.mxu1 %v1134_v24 }
 0x11b   : > { %976 = vmatprep.subr.bf16.mxu1 %v1493_v8 }
 0x11e   : > { %977 = vmatpush3.bf16.msra.mxu1 %v1135_v25 }
 0x11f   : > { %978 = vmatprep.subr.bf16.mxu1 %v1493_v8 }
 0x122   : > { %979 = vmatpush3.bf16.msra.mxu1 %v1136_v26 }
 0x123   : > { %980 = vmatprep.subr.bf16.mxu1 %v1493_v8 }
 0x126   : > { %981 = vmatpush3.bf16.msra.mxu1 %v1138_v28 }
 0x195   : > { %v459_v2 = vpop.xlane.xlu0 %458 }
 0x196   : > { %v461_v3 = vmul.f32 0.03125, %v459_v2 }
 0x198   : > { %v462_v4 = vsub.f32 %v1870_v0, %v461_v3 }
 0x19a   : > { %v463_v5 = vmul.f32 %v462_v4, %v462_v4 }
 0x19c   : > { %v464_v6 = vsel %vm456_vm0, %v463_v5, 0.0 }
 0x19d   : > { %465 = vadd.xlane.f32.xlu0 %v464_v6 }
 0x22a   : > { %v466_v14 = vpop.xlane.xlu0 %465 }
 0x22b   : > { %v467_v15 = vmul.f32 0.03125, %v466_v14 }
 0x22d   : > { %v468_v16 = vadd.f32 1e-05, %v467_v15 }
 0x22f   : > { %1140 = vrsqrt.f32 %v468_v16 }
 0x239   : > { %v1141_v17 = vpop.eup %1140 }
 0x23a   : > { %v470_v19 = vmul.f32 %v1141_v17, %v462_v4 }
 0x23c   : > { %v478_v21 = vmul.f32 %v920_v18, %v470_v19 }
 0x23e   : > { %v486_v22 = vadd.f32 %v921_v20, %v478_v21 }
 0x240   : > { %v487_v23 = vpack.c.bf16 %v486_v22, %v486_v22 }
 0x242   : > { %963 = vmatmul.mubr.msk.bf16.vlgmr.msra.gmra.mrb[0].mxu0 %vm456_vm0, %v487_v23 }
 0x243   : > { %990 = vmatprep.mubr.msk.bf16.mxu0 %vm1494_vm1, %v1493_v8  ;;  %987 = vmatpush3.bf16.msra.mxu0 %v1137_v27 }
 0x244   : > { %988 = vmatprep.subr.bf16.mxu0 %v1493_v8 }
 0x247   : > { %989 = vmatpush3.bf16.msra.mxu0 %v1139_v29 }
 0x24a   : > { %991 = vmatmul.mubr.msk.bf16.vlgmr.msra.gmra.mrb[4].mxu0 %vm456_vm0, %v667_v30 }
 0x315   : > { %v548_v32 = vpop.f32.mrb[0].mxu0 }
 0x316   : > { %v549_v33 = vadd.f32 %v922_v31, %v548_v32  ;;  %v964_v34 = vpop.f32.mrb[1].mxu0 }
 0x317   : > { %v551_v35 = vpop.f32.mrb[2].mxu0 }
 0x318   : > { %1142 = vtanh.f32 %v549_v33  ;;  %v965_v36 = vpop.f32.mrb[3].mxu0 }
 0x31d   : > { %v728_v39 = vpop.f32.mrb[4].mxu0 }
 0x31e   : > { %v992_v40 = vpop.f32.mrb[5].mxu0 }
 0x31f   : > { %v731_v41 = vpop.f32.mrb[6].mxu0 }
 0x320   : > { %v993_v42 = vpop.f32.mrb[7].mxu0 }
 0x322   : > { %v1143_v37 = vpop.eup %1142 }
 0x323   : > { %v555_v38 = vpack.c.bf16 %v1143_v37, %v1143_v37 }
 0x325   : > { %983 = vmatmul.mubr.bf16.vlgmr.msra.gmra.mrb[0].mxu1 %v555_v38 }
 0x3f8   : > { %v661_v44 = vpop.f32.mrb[0].mxu1 }
 0x3f9   : > { %v662_v46 = vadd.f32 %v926_v43, %v661_v44  ;;  %v984_v47 = vpop.f32.mrb[1].mxu1 }
 0x3fa   : > { %v664_v48 = vpop.f32.mrb[2].mxu1 }
 0x3fb   : > { %v995_v49 = vadd.f32 %v935_v45, %v662_v46  ;;  %v985_v50 = vpop.f32.mrb[3].mxu1 }
 0x3fd   : > { %v996_v51 = vadd.f32 %v995_v49, %v728_v39 }
 0x3ff   : > { %735 = vst [vmem:[%s453_s20] sm:$0xff] %v996_v51 }
 0x400   : > { %1411 = shalt.err (!%p1408_p11)
}
 0x401   : > { %s1412_s28 = scalar_lea.hbm %s1889_s22, 128  ;;  %s1416_s23 = scalar_lea.hbm %s1942_s9, 256 }
 0x402   : > { %p1413_p12 = scmp.ne.s32.totalorder %s1889_s22, %s1412_s28  ;;  %p1417_p7 = scmp.lt.u32.totalorder %s1889_s22, %s1942_s9 }
 0x403   : > { %p1418_p6 = scmp.lt.u32.totalorder %s1416_s23, %s1412_s28  ;;  %p1420_p4 = scmp.lt.u32.totalorder %s1412_s28, %s1889_s22 }
 0x404   : > { %p1414_p8 = pnand %p1413_p12, %p1968_p1 }
 0x405   : > { %p1419_p9 = por %p1418_p6, %p1417_p7 }
 0x406   : > { %p1415_p5 = pneg %p1414_p8 }
 0x407   : > { %p1421_p13 = por %p1420_p4, %p1419_p9 }
 0x409   : > { %p1422_p0 = pnand %p1421_p13, %p1415_p5 }
 0x40b   : > { %1425 = shalt.err (!%p1422_p0)
}
 0x40c   : > { %1031 = dma.vmem_to_hbm [thread:$0]  (%p1968_p1), %s1891_s14, 128, %s1889_s22, %s737_s21  }
 0x40d PF: > { %s762_s1 = sand.u32 1, %s1468_s30   ;;  %p1969_p2 = scmp.ne.s32.totalorder %s1957_s24, 0 }
 0x40e   : > { %p1970_p3 = scmp.ge.s32.totalorder %s1480_s12, 2  ;;  %s763_s27 = scalar_lea.sflag [#allocation4], %s762_s1 }
 0x410   : > { %p1063_p10 = pnand %p1970_p3, %p1969_p2 }
 0x412   : > { %1463 = dma.done.wait (!%p1063_p10), %s763_s27, 128  }
 0x413   : > { %1465 = vsyncadd (!%p1063_p10), %s763_s27, 4294967168  ;;  %p26_p11 = scmp.ge.s32.totalorder %s1768_s19, 4   ;;  %s1971_s30 = smov %s1472_s10 }
 0x414   : > { %s1972_s10 = smov %s1476_s11  ;;  %s1973_s11 = smov %s1779_s17 }
 0x415   : > { %s1974_s12 = smov %s1768_s19  ;;  %28 = sbr.rel (!%p26_p11) target bundleno = 12 (0xc), region = 133 }
 0x41c   :  { %768 = vsyncpa [#allocation3], 1 }
 0x41d   :  { %770 = vsyncpa [#allocation3 + $0x1], 1 }
 0x41e   :  { %771 = vsyncpa [#allocation6], 1 }
 0x41f   :  { %772 = vsyncpa [#allocation9], 1 }
 0x420   :  { %773 = vsyncpa [#allocation12], 1 }
 0x421   :  { %774 = vsyncpa [#allocation15], 1 }
 0x422   :  { %775 = vsyncpa [#allocation4], 1 }
 0x423   :  { %777 = vsyncpa [#allocation4 + $0x1], 1 }

</bundles_post_ra>
